<compile_context>
chip_gen: v7x
topology: tpu7x:2x2x1
jax: 0.10.0
libtpu: 0.0.40
codegen_flags: <defaults>
</compile_context>

<pallas_src>
import jax
import jax.numpy as jnp
from jax.experimental import pallas as pl
from jax.experimental.pallas import tpu as pltpu


def _round_up(n: int, m: int) -> int:
    return ((n + m - 1) // m) * m


def _cdiv(a: int, b: int) -> int:
    return -(-a // b)


def bayes_linear_kernel(p_ref, x_ref, o_ref):
    """p_ref: (6, OUT, 1)   x_ref: (1, TILE_B)   o_ref: (OUT, TILE_B).

    p_ref stacks [w_mu, w_rho, w_eps, b_mu, b_rho, b_eps], each transposed to
    (OUT, 1).  With in_features == 1 the linear layer is an outer product:
        y.T = w_col * x_row + b_col   -- a pure VPU broadcast multiply-add.
    """
    def softplus(r):
        # Numerically stable: max(r, 0) + log1p(exp(-|r|)); exp/log1p on the EUP.
        return jnp.maximum(r, 0.0) + jnp.log1p(jnp.exp(-jnp.abs(r)))

    # Reparameterized sample, (OUT, 1).  Tiny; recomputed per grid step on slack
    # EUP/VALU slots (a pl.when(program_id==0) hoist is unsafe under "parallel"
    # sharding since only one core would see program_id 0).
    w = p_ref[0] + softplus(p_ref[1]) * p_ref[2]      # (OUT, 1)
    b = p_ref[3] + softplus(p_ref[4]) * p_ref[5]      # (OUT, 1)

    # (OUT, 1) * (1, TILE_B) + (OUT, 1) -> (OUT, TILE_B); lane-dense stores.
    o_ref[...] = (w * x_ref[...] + b).astype(o_ref.dtype)


def bayes_linear_transposed(x, w_mu, w_rho, w_eps, b_mu, b_rho, b_eps,
                            *, max_tile_b=8192):
    """Returns y.T with shape (out_features, b_pad); columns >= B are padding."""
    B, in_features = x.shape
    assert in_features == 1, "BayesLinear(1, 10): kernel specialised to in_features=1"
    out_features = w_mu.shape[1]

    # --- tile selection --------------------------------------------------------
    # Lane axis must be a multiple of 128.  Keep >=2 grid steps when B is large so
    # the "parallel" batch axis can shard across TensorCores; per-step padding is
    # bounded by <128 columns.
    b128 = _round_up(max(B, 1), 128)
    num_steps = 1 if b128 <= 128 else max(2, _cdiv(b128, max_tile_b))
    tile_b = _round_up(_cdiv(b128, num_steps), 128)
    b_pad = tile_b * num_steps
    # VMEM per step (f32, x2 double buffers): out (OUT, tile_b) + x (1, tile_b)
    # ~ 0.7 MiB at tile_b=8192 -> far under all scoped-VMEM defaults.

    # --- layout plumbing (wrapper only, no math) --------------------------------
    x_row = jnp.pad(jnp.reshape(x, (1, B)), ((0, 0), (0, b_pad - B)))   # (1, b_pad)
    # One stacked parameter array -> a single resident DMA stream in VMEM.
    params = jnp.stack([w_mu.T, w_rho.T, w_eps.T,
                        b_mu.T, b_rho.T, b_eps.T])                      # (6, OUT, 1)

    y_t = pl.pallas_call(
        bayes_linear_kernel,
        out_shape=jax.ShapeDtypeStruct((out_features, b_pad), x.dtype),
        grid=(num_steps,),
        in_specs=[
            # Parameters: same block every step -> resident in VMEM across the grid.
            pl.BlockSpec((6, out_features, 1), lambda i: (0, 0, 0)),
            # x: lane-dense (1, tile_b) blocks over the batch/lane axis.
            pl.BlockSpec((1, tile_b), lambda i: (0, i)),
        ],
        # Output: (OUT, tile_b) blocks -- lane-dense, zero feature padding to HBM.
        out_specs=pl.BlockSpec((out_features, tile_b), lambda i: (0, i)),
        compiler_params=pltpu.CompilerParams(
            dimension_semantics=("parallel",),      # shard batch grid across TCs
        ),
    )(params, x_row)
    return y_t                                      # (out_features, b_pad)


def dummy_model_linear_forward(x, params):
    """Mirrors DummyModelLinear.forward(x) -> (B, out_features).

    The kernel emits the transposed, lane-dense layout (out_features, b_pad);
    consumers that can accept that layout should call bayes_linear_transposed()
    directly and skip this trim + transpose copy.
    """
    B = x.shape[0]
    y_t = bayes_linear_transposed(
        x, params["w_mu"], params["w_rho"], params["w_eps"],
        params["b_mu"], params["b_rho"], params["b_eps"])
    return y_t[:, :B].T


def init_params(key, in_features=1, out_features=10):
    k_wmu, k_bmu, k_weps, k_beps = jax.random.split(key, 4)
    # Deterministic synthetic initialization (shapes follow BayesLinear(1, 10)).
    w_mu = jax.random.normal(k_wmu, (in_features, out_features), jnp.float32) * 0.1
    b_mu = jax.random.normal(k_bmu, (1, out_features), jnp.float32) * 0.1
    w_rho = jnp.full((in_features, out_features), -3.0, jnp.float32)   # softplus(-3) ~ 0.0486
    b_rho = jnp.full((1, out_features), -3.0, jnp.float32)
    # One deterministic MC sample of the weight/bias noise (the stochastic part).
    w_eps = jax.random.normal(k_weps, (in_features, out_features), jnp.float32)
    b_eps = jax.random.normal(k_beps, (1, out_features), jnp.float32)
    return {"w_mu": w_mu, "w_rho": w_rho, "w_eps": w_eps,
            "b_mu": b_mu, "b_rho": b_rho, "b_eps": b_eps}


if __name__ == "__main__":
    key = jax.random.PRNGKey(0)
    k_params, k_x = jax.random.split(key)

    in_features, out_features, batch = 1, 10, 8
    params = init_params(k_params, in_features, out_features)
    x = jax.random.normal(k_x, (batch, in_features), jnp.float32)

    y = dummy_model_linear_forward(x, params)
    y = jax.block_until_ready(y)

    # Reference check in plain JAX (same math, outside Pallas).
    w = params["w_mu"] + jax.nn.softplus(params["w_rho"]) * params["w_eps"]
    b = params["b_mu"] + jax.nn.softplus(params["b_rho"]) * params["b_eps"]
    y_ref = x @ w + b
    assert y.shape == (batch, out_features)
    assert jnp.allclose(y, y_ref, atol=1e-5, rtol=1e-5)

    print("KERNEL_OK")
</pallas_src>

<mosaic_0001>
module attributes {stable_mosaic.version = 11 : i64} {
  func.func @bayes_linear_kernel(%arg0: i32, %arg1: memref<6x10x1xf32, #tpu.memory_space<vmem>>, %arg2: memref<1x128xf32, #tpu.memory_space<vmem>>, %arg3: memref<10x128xf32, #tpu.memory_space<vmem>>) attributes {dimension_semantics = [#tpu.dimension_semantics<parallel>], iteration_bounds = array<i64: 1>, scalar_prefetch = 0 : i64, scratch_operands = 0 : i64, tpu.core_type = #tpu.core_type<tc>, window_params = [{pipeline_mode = #tpu.pipeline_mode<synchronous>, transform_indices = @transform_0, window_bounds = array<i64: 6, 10, 1>}, {transform_indices = @transform_1, window_bounds = array<i64: 1, 128>}, {transform_indices = @transform_2, window_bounds = array<i64: 10, 128>}]} {
    %c0 = arith.constant 0 : index
    %c0_0 = arith.constant 0 : index
    %c0_1 = arith.constant 0 : index
    %0 = vector.load %arg1[%c0, %c0_0, %c0_1] : memref<6x10x1xf32, #tpu.memory_space<vmem>>, vector<1x10x1xf32>
    %1 = vector.shape_cast %0 : vector<1x10x1xf32> to vector<10x1xf32>
    %c1 = arith.constant 1 : index
    %c0_2 = arith.constant 0 : index
    %c0_3 = arith.constant 0 : index
    %2 = vector.load %arg1[%c1, %c0_2, %c0_3] : memref<6x10x1xf32, #tpu.memory_space<vmem>>, vector<1x10x1xf32>
    %3 = vector.shape_cast %2 : vector<1x10x1xf32> to vector<10x1xf32>
    %cst = arith.constant 0.000000e+00 : f32
    %4 = vector.broadcast %cst : f32 to vector<10x1xf32>
    %5 = arith.maximumf %3, %4 : vector<10x1xf32>
    %6 = math.absf %3 : vector<10x1xf32>
    %cst_4 = arith.constant 0.000000e+00 : f32
    %7 = vector.broadcast %cst_4 : f32 to vector<10x1xf32>
    %8 = arith.subf %7, %6 : vector<10x1xf32>
    %9 = math.exp %8 : vector<10x1xf32>
    %10 = math.log1p %9 : vector<10x1xf32>
    %11 = arith.addf %5, %10 : vector<10x1xf32>
    %c2 = arith.constant 2 : index
    %c0_5 = arith.constant 0 : index
    %c0_6 = arith.constant 0 : index
    %12 = vector.load %arg1[%c2, %c0_5, %c0_6] : memref<6x10x1xf32, #tpu.memory_space<vmem>>, vector<1x10x1xf32>
    %13 = vector.shape_cast %12 : vector<1x10x1xf32> to vector<10x1xf32>
    %14 = arith.mulf %11, %13 : vector<10x1xf32>
    %15 = arith.addf %1, %14 : vector<10x1xf32>
    %c3 = arith.constant 3 : index
    %c0_7 = arith.constant 0 : index
    %c0_8 = arith.constant 0 : index
    %16 = vector.load %arg1[%c3, %c0_7, %c0_8] : memref<6x10x1xf32, #tpu.memory_space<vmem>>, vector<1x10x1xf32>
    %17 = vector.shape_cast %16 : vector<1x10x1xf32> to vector<10x1xf32>
    %c4 = arith.constant 4 : index
    %c0_9 = arith.constant 0 : index
    %c0_10 = arith.constant 0 : index
    %18 = vector.load %arg1[%c4, %c0_9, %c0_10] : memref<6x10x1xf32, #tpu.memory_space<vmem>>, vector<1x10x1xf32>
    %19 = vector.shape_cast %18 : vector<1x10x1xf32> to vector<10x1xf32>
    %cst_11 = arith.constant 0.000000e+00 : f32
    %20 = vector.broadcast %cst_11 : f32 to vector<10x1xf32>
    %21 = arith.maximumf %19, %20 : vector<10x1xf32>
    %22 = math.absf %19 : vector<10x1xf32>
    %cst_12 = arith.constant 0.000000e+00 : f32
    %23 = vector.broadcast %cst_12 : f32 to vector<10x1xf32>
    %24 = arith.subf %23, %22 : vector<10x1xf32>
    %25 = math.exp %24 : vector<10x1xf32>
    %26 = math.log1p %25 : vector<10x1xf32>
    %27 = arith.addf %21, %26 : vector<10x1xf32>
    %c5 = arith.constant 5 : index
    %c0_13 = arith.constant 0 : index
    %c0_14 = arith.constant 0 : index
    %28 = vector.load %arg1[%c5, %c0_13, %c0_14] : memref<6x10x1xf32, #tpu.memory_space<vmem>>, vector<1x10x1xf32>
    %29 = vector.shape_cast %28 : vector<1x10x1xf32> to vector<10x1xf32>
    %30 = arith.mulf %27, %29 : vector<10x1xf32>
    %31 = arith.addf %17, %30 : vector<10x1xf32>
    %c0_15 = arith.constant 0 : index
    %c0_16 = arith.constant 0 : index
    %32 = vector.load %arg2[%c0_15, %c0_16] : memref<1x128xf32, #tpu.memory_space<vmem>>, vector<1x128xf32>
    %33 = vector.broadcast %15 : vector<10x1xf32> to vector<10x128xf32>
    %34 = vector.broadcast %32 : vector<1x128xf32> to vector<10x128xf32>
    %35 = arith.mulf %33, %34 : vector<10x128xf32>
    %36 = vector.broadcast %31 : vector<10x1xf32> to vector<10x128xf32>
    %37 = arith.addf %35, %36 : vector<10x128xf32>
    %c0_17 = arith.constant 0 : index
    %c0_18 = arith.constant 0 : index
    %38 = vector.load %arg3[%c0_17, %c0_18] : memref<10x128xf32, #tpu.memory_space<vmem>>, vector<10x128xf32>
    tpu.vector_store %arg3[%c0_17, %c0_18], %37 {strides = array<i32>} : memref<10x128xf32, #tpu.memory_space<vmem>>, vector<10x128xf32>,
    return
  }
  func.func @transform_0(%arg0: i32) -> (i32, i32, i32) {
    %c0_i32 = arith.constant 0 : i32
    %c0_i32_0 = arith.constant 0 : i32
    %c0_i32_1 = arith.constant 0 : i32
    %c0_i32_2 = arith.constant 0 : i32
    return %c0_i32, %c0_i32_0, %c0_i32_1 : i32, i32, i32
  }
  func.func @transform_1(%arg0: i32) -> (i32, i32) {
    %c0_i32 = arith.constant 0 : i32
    %c0_i32_0 = arith.constant 0 : i32
    return %c0_i32, %arg0 : i32, i32
  }
  func.func @transform_2(%arg0: i32) -> (i32, i32) {
    %c0_i32 = arith.constant 0 : i32
    %c0_i32_0 = arith.constant 0 : i32
    return %c0_i32, %arg0 : i32, i32
  }
}

</mosaic_0001>

<bundles_post_ra>
// kernel: tpu_custom_call.1
= control target key start
LH: loop header
LB: loop body
LE: loop exit
PB: predicated region body
PF: predicated region fallthrough
CT: control target
= control target key end

     0   :  { %v203_v1 = vmov 0   ;;  %s301_s0 = inlined_call_operand.vmem [shape: f32[6,10,1], index: 0, kind: input, shape index: {}]   ;;  %s302_s1 = inlined_call_operand.vmem [shape: f32[1,128], index: 1, kind: input, shape index: {}]   ;;  %s303_s2 = inlined_call_operand.hbm [shape: f32[10,128], index: 2, kind: output, shape index: {}]  }
   0x1   :  { %v225_v0 = vld [vmem:[%s301_s0 + $0x40] sm:$0xff]  ;;  %162 = vset.pattern.permute.xlu1 %v203_v1  ;;  %161 = vset.pattern.permute.xlu0 %v203_v1  ;;  %v231_v3 = vld [vmem:[%s301_s0 + $0x10] sm:$0xff]  ;;  %v237_v6 = vld [vmem:[%s301_s0 + $0x48] sm:$0x3] }
   0x2   :  { %v62_v2 = vand.u32 2147483647, %v225_v0  ;;  %v19_v4 = vand.u32 2147483647, %v231_v3  ;;  %v63_v8 = vand.u32 2147483647, %v237_v6 }
   0x3   :  { %v243_v10 = vld [vmem:[%s301_s0 + $0x18] sm:$0x3] }
   0x4   :  { %v64_v5 = vsub.f32 0.0, %v62_v2  ;;  %v21_v7 = vsub.f32 0.0, %v19_v4  ;;  %v65_v12 = vsub.f32 0.0, %v63_v8  ;;  %v20_v13 = vand.u32 2147483647, %v243_v10 }
   0x6   :  { %v66_v9 = vmul.f32 1.442695, %v64_v5  ;;  %v23_v11 = vmul.f32 1.442695, %v21_v7 }
   0x8   :  { %163 = vpow2.f32 %v66_v9 }
   0x9   :  { %7 = vsyncpa [#allocation3], 0  ;;  %165 = vpow2.f32 %v23_v11  ;;  %v68_v14 = vmul.f32 1.442695, %v65_v12  ;;  %v22_v15 = vsub.f32 0.0, %v20_v13  ;;  %v60_v34 = vmax.f32 %v225_v0, 0.0 }
   0xa   :  { %v17_v38 = vmax.f32 %v231_v3, 0.0  ;;  %v154_v49 = vld [vmem:[%s301_s0 + $0x50] sm:$0xff]  ;;  %v61_v50 = vmax.f32 %v237_v6, 0.0  ;;  %v148_v54 = vld [vmem:[%s301_s0 + $0x20] sm:$0xff]  ;;  %v18_v60 = vmax.f32 %v243_v10, 0.0  ;;  %s204_s7 = smov [#allocation2]  }
   0xb   :  { %167 = vpow2.f32 %v68_v14  ;;  %v25_v16 = vmul.f32 1.442695, %v22_v15  ;;  %v150_v58 = vld [vmem:[%s301_s0 + $0x30] sm:$0xff]  ;;  %v12_v62 = vld [vmem:[%s301_s0] sm:$0xff]  ;;  %v155_v0 = vld [vmem:[%s301_s0 + $0x58] sm:$0x3] }
   0xc   :  { %v151_v5 = vld [vmem:[%s301_s0 + $0x38] sm:$0x3]  ;;  %v149_v7 = vld [vmem:[%s301_s0 + $0x28] sm:$0x3]  ;;  %v156_v15 = vld [vmem:[%s302_s1] ss:$0 sm:$0xff] }
   0xd   :  { %169 = vpow2.f32 %v25_v16  ;;  %v13_v11 = vld [vmem:[%s301_s0 + $0x8] sm:$0x3]  ;;  %s135_s8 = sshll.u32 %s204_s7, 4  ;;  %s136_s8 = int_to_ptr.vmem [resolvable:$true] %s135_s8 }
   0xe   :  { %s179_s0 = scalar_lea.vmem %s136_s8, 256  ;;  %p184_p1 = scmp.lt.s32.totalorder %s136_s8, %s136_s8 }
   0xf   :  { %p180_p0 = scmp.ne.s32.totalorder %s136_s8, %s179_s0  ;;  %p185_p2 = scmp.lt.s32.totalorder %s179_s0, %s179_s0 }
  0x11   :  { %p186_p3 = por %p185_p2, %p184_p1 }
  0x12   :  { %v164_v17 = vpop.eup %163 }
  0x13   :  { %v166_v18 = vpop.eup %165  ;;  %v70_v19 = vadd.f32 1.0, %v164_v17  ;;  %v73_v22 = vmul.f32 -0.5, %v164_v17  ;;  %v76_v29 = vand.u32 2147483647, %v164_v17  ;;  %p187_p4 = pnand %p186_p3, %p180_p0 }
  0x14   :  { %v27_v20 = vadd.f32 1.0, %v166_v18  ;;  %v30_v25 = vmul.f32 -0.5, %v166_v18  ;;  %v33_v32 = vand.u32 2147483647, %v166_v18 }
  0x15   :  { %v168_v21 = vpop.eup %167  ;;  %171 = vlog2.f32 %v70_v19  ;;  %v74_v28 = vadd.f32 1.0, %v73_v22  ;;  %vm77_vm0 = vcmp.lt.f32.partialorder %v76_v29, 0.0004427343 }
  0x16   :  { %173 = vlog2.f32 %v27_v20  ;;  %v79_v23 = vadd.f32 1.0, %v168_v21  ;;  %v82_v27 = vmul.f32 -0.5, %v168_v21  ;;  %v31_v30 = vadd.f32 1.0, %v30_v25 }
  0x17   :  { %v170_v24 = vpop.eup %169  ;;  %v75_v35 = vmul.f32 %v164_v17, %v74_v28  ;;  %v85_v36 = vand.u32 2147483647, %v168_v21  ;;  %vm248_vm1 = vcmp.lt.f32.partialorder %v33_v32, 0.0004427343 }
  0x18   :  { %175 = vlog2.f32 %v79_v23  ;;  %v36_v26 = vadd.f32 1.0, %v170_v24  ;;  %v39_v31 = vmul.f32 -0.5, %v170_v24  ;;  %v83_v33 = vadd.f32 1.0, %v82_v27 }
  0x19   :  { %v32_v39 = vmul.f32 %v166_v18, %v31_v30  ;;  %v42_v44 = vand.u32 2147483647, %v170_v24  ;;  %vm256_vm2 = vcmp.lt.f32.partialorder %v85_v36, 0.0004427343 }
  0x1a   :  { %177 = vlog2.f32 %v36_v26  ;;  %v40_v40 = vadd.f32 1.0, %v39_v31  ;;  %v84_v46 = vmul.f32 %v168_v21, %v83_v33 }
  0x1b   :  { %vm43_vm3 = vcmp.lt.f32.partialorder %v42_v44, 0.0004427343 }
  0x1c   :  { %v41_v56 = vmul.f32 %v170_v24, %v40_v40 }
  0x1f   :  { %v172_v37 = vpop.eup %171 }
  0x20   :  { %v174_v41 = vpop.eup %173  ;;  %v72_v42 = vmul.f32 0.6931472, %v172_v37 }
  0x21   :  { %v29_v45 = vmul.f32 0.6931472, %v174_v41 }
  0x22   :  { %v176_v47 = vpop.eup %175  ;;  %v78_v48 = vsel %vm77_vm0, %v75_v35, %v72_v42 }
  0x23   :  { %v88_v52 = vadd.f32 %v78_v48, %v60_v34  ;;  %v35_v53 = vsel %vm248_vm1, %v32_v39, %v29_v45  ;;  %v81_v55 = vmul.f32 0.6931472, %v176_v47 }
  0x24   :  { %v178_v57 = vpop.eup %177  ;;  %v45_v59 = vadd.f32 %v35_v53, %v17_v38 }
  0x25   :  { %v93_v61 = vmul.f32 %v154_v49, %v88_v52  ;;  %v87_v63 = vsel %vm256_vm2, %v84_v46, %v81_v55  ;;  %v38_v1 = vmul.f32 0.6931472, %v178_v57 }
  0x26   :  { %v50_v2 = vmul.f32 %v148_v54, %v45_v59  ;;  %v89_v3 = vadd.f32 %v87_v63, %v61_v50 }
  0x27   :  { %v95_v4 = vadd.f32 %v150_v58, %v93_v61  ;;  %v44_v6 = vsel %vm43_vm3, %v41_v56, %v38_v1 }
  0x28   :  { %v52_v8 = vadd.f32 %v50_v2, %v12_v62  ;;  %v94_v9 = vmul.f32 %v155_v0, %v89_v3  ;;  %v46_v10 = vadd.f32 %v44_v6, %v18_v60 }
  0x29   :  { %118 = vperm.xlu1 %162, %v95_v4  }
  0x2a   :  { %100 = vperm.xlu0 %161, %v52_v8   ;;  %v96_v12 = vadd.f32 %v151_v5, %v94_v9  ;;  %v51_v13 = vmul.f32 %v149_v7, %v46_v10 }
  0x2c   :  { %v53_v14 = vadd.f32 %v51_v13, %v13_v11 }
  0x2d   :  { %123 = vperm.xlu1 %162, %v96_v12  }
  0x2e   :  { %105 = vperm.xlu0 %161, %v53_v14  }
  0xa8   :  { %v119_v16 = vpop.permute.xlu1 %118 }
  0xa9   :  { %v101_v17 = vpop.permute.xlu0 %100 }
  0xaa   :  { %v114_v18 = vmul.f32 %v156_v15, %v101_v17 }
  0xac   :  { %v126_v19 = vadd.f32 %v119_v16, %v114_v18  ;;  %v124_v22 = vpop.permute.xlu1 %123 }
  0xad   :  { %v106_v20 = vpop.permute.xlu0 %105 }
  0xae   :  { %128 = vst [vmem:[#allocation2] sm:$0xff] %v126_v19  ;;  %v115_v21 = vmul.f32 %v156_v15, %v106_v20 }
  0xb0   :  { %v127_v23 = vadd.f32 %v124_v22, %v115_v21 }
  0xb2   :  { %129 = vst [vmem:[#allocation2 + $0x8] sm:$0x3] %v127_v23 }
  0xb3   :  { %190 = shalt.err (!%p187_p4)
}
  0xb4   :  { %s191_s10 = scalar_lea.hbm %s303_s2, 256 }
  0xb5   :  { %p192_p5 = scmp.ne.s32.totalorder %s303_s2, %s191_s10  ;;  %p195_p6 = scmp.lt.u32.totalorder %s191_s10, %s303_s2 }
  0xb7   :  { %p197_p7 = pnand %p195_p6, %p192_p5 }
  0xb9   :  { %200 = shalt.err (!%p197_p7)
}
  0xba   :  { %s205_s15 = smov 128   ;;  %s206_s16 = smov 8  }
  0xbb   :  { %141 = dma.vmem_to_hbm [thread:$0]  %s136_s8, 256, %s303_s2, [#allocation3], %s205_s15, %s205_s15, %s206_s16  }
  0xbc   :  { %201 = dma.done.wait [#allocation3], 256  }
  0xbd   :  { %202 = vsyncadd [#allocation3], 4294967040 }
  0xbe   :  { %145 = vsyncpa [#allocation3], 1 }

</bundles_post_ra>
